<compile_context>
chip_gen: v6e
topology: v6e:2x2x1
jax: 0.10.0
libtpu: 0.0.40
codegen_flags: <defaults>
</compile_context>

<pallas_src>
import functools
import math

import jax
import jax.numpy as jnp
from jax.experimental import pallas as pl
from jax.experimental.pallas import tpu as pltpu


# ----------------------------------------------------------------------------
# In-kernel helpers (only ops with guaranteed Mosaic lowerings)
# ----------------------------------------------------------------------------
def _layernorm(x, w, b, eps=1e-6):
    # x: (N, D) fp32, w/b: (1, D).  eps matches partial(nn.LayerNorm, eps=1e-06).
    mu = jnp.mean(x, axis=-1, keepdims=True)
    xc = x - mu
    var = jnp.mean(xc * xc, axis=-1, keepdims=True)
    return xc * jax.lax.rsqrt(var + eps) * w + b


def _erf(x):
    """Abramowitz & Stegun 7.1.26 erf approximation (|err| < 1.5e-7 in fp32).

    Avoids depending on a lax.erf Mosaic lowering; uses only exp / mul / add /
    abs / where, which lower on every TPU generation (and have bf16 VPU paths
    on v6e/v7x)."""
    dt = x.dtype
    p = jnp.asarray(0.3275911, dt)
    a1 = jnp.asarray(0.254829592, dt)
    a2 = jnp.asarray(-0.284496736, dt)
    a3 = jnp.asarray(1.421413741, dt)
    a4 = jnp.asarray(-1.453152027, dt)
    a5 = jnp.asarray(1.061405429, dt)
    one = jnp.asarray(1.0, dt)
    sgn = jnp.where(x < 0, -one, one)
    ax = jnp.abs(x)
    t = one / (one + p * ax)
    poly = ((((a5 * t + a4) * t + a3) * t + a2) * t + a1) * t
    return sgn * (one - poly * jnp.exp(-ax * ax))


def _gelu_exact(x):
    """erf-based GELU, matching nn.GELU's default (approximate='none')."""
    dt = x.dtype
    half = jnp.asarray(0.5, dt)
    one = jnp.asarray(1.0, dt)
    inv_sqrt2 = jnp.asarray(0.7071067811865476, dt)
    return x * half * (one + _erf(x * inv_sqrt2))


# ----------------------------------------------------------------------------
# One EncoderBlock for `Bt` batch elements per grid step.  All weights are
# resident in VMEM as full, single-buffered blocks (pre-transposed, bf16).
# ----------------------------------------------------------------------------
def encoder_block_kernel(num_heads, compute_dtype, gelu_dtype,
                         x_ref,
                         ln1w_ref, ln1b_ref,
                         wqkv_ref, bqkv_ref,      # (D, 3D) cd, (1, 3D) f32
                         wo_ref, bo_ref,          # (D, D)  cd, (1, D)  f32
                         ln2w_ref, ln2b_ref,
                         w1_ref, b1_ref,          # (D, mlp) cd, (1, mlp) f32
                         w2_ref, b2_ref,          # (mlp, D) cd, (1, D)  f32
                         out_ref):
    Bt, S, D = x_ref.shape
    H = num_heads
    Dh = D // H
    N = Bt * S
    scale = 1.0 / math.sqrt(Dh)

    # Residual stream stays fp32; MXU operands are cast to compute_dtype.
    x = x_ref[...].reshape(N, D).astype(jnp.float32)

    def mm(a, w_ref):
        # Weights already stored in compute_dtype, (in, out) layout: y = a @ W,
        # fp32 accumulation on the MXU.
        return jnp.dot(a.astype(compute_dtype), w_ref[...],
                       preferred_element_type=jnp.float32)

    # --- LayerNorm 1 -------------------------------------------------------
    h = _layernorm(x, ln1w_ref[...], ln1b_ref[...])

    # --- Multi-head self-attention (batch_first, no mask, eval) ------------
    qkv = mm(h, wqkv_ref) + bqkv_ref[...]            # (N, 3D), fp32

    def split_heads(t2d):
        # (S, D) -> (H, S, Dh) head-major using only static lane slices + a
        # leading-axis stack (no in-kernel transpose / lane-splitting reshape).
        return jnp.stack([t2d[:, hh * Dh:(hh + 1) * Dh] for hh in range(H)],
                         axis=0).astype(compute_dtype)

    attn_rows = []
    for bi in range(Bt):                             # static unroll; Bt is small
        rows = qkv[bi * S:(bi + 1) * S]              # (S, 3D), static slice
        q = split_heads(rows[:, 0 * D:1 * D] * scale)    # scale folded into q
        k = split_heads(rows[:, 1 * D:2 * D])
        v = split_heads(rows[:, 2 * D:3 * D])

        # head-batched score GEMM: (H, S, S), fp32 accumulation
        s = jnp.einsum('hqd,hkd->hqk', q, k, preferred_element_type=jnp.float32)
        m = jnp.max(s, axis=-1, keepdims=True)
        e = jnp.exp(s - m)
        p = e * pl.reciprocal(jnp.sum(e, axis=-1, keepdims=True), approx=True)

        # head-batched PV GEMM: (H, S, Dh) -> merge heads -> (S, D)
        o = jnp.einsum('hqk,hkd->hqd', p.astype(compute_dtype), v,
                       preferred_element_type=jnp.float32)
        attn_rows.append(jnp.concatenate([o[hh] for hh in range(H)], axis=-1))
    attn = attn_rows[0] if Bt == 1 else jnp.concatenate(attn_rows, axis=0)

    # output projection (single full-width GEMM)
    # TODO(synk): fuse the head-merge concat into this GEMM via a (H, Dh, D)
    # weight einsum once multi-contracting-dim dot_general lowering is verified
    # on all target generations.
    attn = mm(attn, wo_ref) + bo_ref[...]

    # residual 1 (dropout is identity in eval mode)
    x = x + attn

    # --- LayerNorm 2 + MLP --------------------------------------------------
    h2 = _layernorm(x, ln2w_ref[...], ln2b_ref[...])
    y = mm(h2, w1_ref) + b1_ref[...]                 # (N, mlp), fp32
    # exact (erf) GELU; gelu_dtype=bf16 uses the bf16 VPU path on v6e/v7x,
    # pass jnp.float32 on v5e (no bf16 VPU/EUP).
    y = _gelu_exact(y.astype(gelu_dtype))
    y = mm(y, w2_ref) + b2_ref[...]                  # (N, D), fp32

    # residual 2
    out_ref[...] = (x + y).reshape(Bt, S, D).astype(out_ref.dtype)


# ----------------------------------------------------------------------------
# Host-side wrapper
# ----------------------------------------------------------------------------
def _const_spec(shape):
    """Full-array weight/bias spec: constant index_map + single-buffered (the
    block never changes across grid steps, so double-buffering only doubles
    VMEM residency)."""
    nd = len(shape)
    return pl.BlockSpec(shape, lambda b, _nd=nd: (0,) * _nd,
                        pipeline_mode=pl.Buffered(1))


def _vmem_limit_bytes():
    """Per-generation scoped-VMEM limit: ~3/4 of physical, capped at 100 MiB
    (~96 MiB on v5e/v6e's 128 MiB, ~48 MiB on v7x's 64 MiB)."""
    try:
        cap = int(pltpu.get_tpu_info().vmem_capacity_bytes)
    except Exception:
        cap = 128 << 20
    return int(min(cap * 3 // 4, 100 << 20))


def _choose_block_batch(B, S, D, mlp_dim, num_heads, max_act_bytes=24 << 20):
    """Largest per-step batch tile that (a) keeps an even number of 'parallel'
    grid steps (v7x has 2 TensorCores) and (b) keeps the fp32 activation
    working set modest so the full-weight-resident design still fits VMEM."""
    best = 1
    for bt in range(1, B + 1):
        if B % bt:
            continue
        n = bt * S
        act = 4 * (7 * n * D + num_heads * S * S + n * mlp_dim)
        if act > max_act_bytes:
            continue
        if (B // bt) % 2 == 0:
            best = bt
    return best


def encoder_block_apply(x, params, num_heads, gelu_dtype=None, block_batch=None):
    """x: (B, S, D); params from prepare_params() (weights pre-transposed to
    (in, out) and stored in the compute dtype)."""
    B, S, D = x.shape
    assert D % num_heads == 0
    compute_dtype = jnp.dtype(params[2].dtype)       # wqkv's storage dtype
    mlp_dim = params[8].shape[1]                     # w1 is (D, mlp)
    if gelu_dtype is None:
        gelu_dtype = compute_dtype                   # pass jnp.float32 on v5e
    if block_batch is None:
        block_batch = _choose_block_batch(B, S, D, mlp_dim, num_heads)
    assert B % block_batch == 0

    kernel = functools.partial(encoder_block_kernel, num_heads,
                               compute_dtype, jnp.dtype(gelu_dtype))
    x_spec = pl.BlockSpec((block_batch, S, D), lambda b: (b, 0, 0))
    in_specs = [x_spec] + [_const_spec(p.shape) for p in params]

    # TODO(synk): for long sequences add a query-tile grid axis with online
    # (flash-style) softmax so the (H, S, S) scores block never materializes.
    return pl.pallas_call(
        kernel,
        out_shape=jax.ShapeDtypeStruct((B, S, D), x.dtype),
        grid=(B // block_batch,),
        in_specs=in_specs,
        out_specs=x_spec,
        compiler_params=pltpu.CompilerParams(
            dimension_semantics=("parallel",),
            vmem_limit_bytes=_vmem_limit_bytes(),
        ),
    )(x, *params)


def prepare_params(pt_params, compute_dtype=jnp.bfloat16):
    """PyTorch-convention params -> kernel layout:
       * Linear weights (out, in) -> (in, out), stored in compute_dtype
         (halves weight DMA + VMEM; MXU accumulates in fp32).
       * LayerNorm params and biases stay fp32, reshaped to (1, N)."""
    (ln1w, ln1b, wqkv, bqkv, wo, bo, ln2w, ln2b, w1, b1, w2, b2) = pt_params
    f32 = jnp.float32
    cd = compute_dtype
    return [
        ln1w.reshape(1, -1).astype(f32), ln1b.reshape(1, -1).astype(f32),
        wqkv.T.astype(cd), bqkv.reshape(1, -1).astype(f32),
        wo.T.astype(cd), bo.reshape(1, -1).astype(f32),
        ln2w.reshape(1, -1).astype(f32), ln2b.reshape(1, -1).astype(f32),
        w1.T.astype(cd), b1.reshape(1, -1).astype(f32),
        w2.T.astype(cd), b2.reshape(1, -1).astype(f32),
    ]


# ----------------------------------------------------------------------------
# Deterministic synthetic parameters (PyTorch layout) + pure-JAX reference
# ----------------------------------------------------------------------------
def init_block_params(key, D, mlp_dim):
    ks = jax.random.split(key, 6)
    s = 0.02
    f32 = jnp.float32
    ln1w = jnp.ones((D,), f32)
    ln1b = jnp.zeros((D,), f32)
    wqkv = s * jax.random.normal(ks[0], (3 * D, D), f32)   # in_proj_weight
    bqkv = jnp.zeros((3 * D,), f32)                        # in_proj_bias
    wo = s * jax.random.normal(ks[1], (D, D), f32)         # out_proj.weight
    bo = jnp.zeros((D,), f32)                              # out_proj.bias
    ln2w = jnp.ones((D,), f32)
    ln2b = jnp.zeros((D,), f32)
    w1 = s * jax.random.normal(ks[2], (mlp_dim, D), f32)   # mlp linear 1
    b1 = 1e-6 * jax.random.normal(ks[3], (mlp_dim,), f32)
    w2 = s * jax.random.normal(ks[4], (D, mlp_dim), f32)   # mlp linear 2
    b2 = 1e-6 * jax.random.normal(ks[5], (D,), f32)
    return [ln1w, ln1b, wqkv, bqkv, wo, bo, ln2w, ln2b, w1, b1, w2, b2]


def encoder_block_reference(x, pt_params, num_heads):
    """Pure-JAX fp32 reference mirroring the PyTorch EncoderBlock (eval)."""
    (ln1w, ln1b, wqkv, bqkv, wo, bo, ln2w, ln2b, w1, b1, w2, b2) = pt_params
    B, S, D = x.shape
    H = num_heads
    Dh = D // H

    def ln(v, w, b, eps=1e-6):
        mu = v.mean(-1, keepdims=True)
        var = ((v - mu) ** 2).mean(-1, keepdims=True)
        return (v - mu) / jnp.sqrt(var + eps) * w + b

    h = ln(x, ln1w, ln1b)
    qkv = h @ wqkv.T + bqkv
    q, k, v = jnp.split(qkv, 3, axis=-1)

    def split(t):
        return t.reshape(B, S, H, Dh).transpose(0, 2, 1, 3)

    q, k, v = split(q), split(k), split(v)
    s = (q @ jnp.swapaxes(k, -1, -2)) / math.sqrt(Dh)
    p = jax.nn.softmax(s, axis=-1)
    a = (p @ v).transpose(0, 2, 1, 3).reshape(B, S, D)
    a = a @ wo.T + bo
    x1 = x + a
    y = ln(x1, ln2w, ln2b)
    y = jax.nn.gelu(y @ w1.T + b1, approximate=False)
    y = y @ w2.T + b2
    return x1 + y


if __name__ == "__main__":
    # small shapes consistent with the module's (batch, seq, hidden) contract
    B, S, D = 2, 8, 32
    num_heads = 4
    mlp_dim = 64

    root = jax.random.PRNGKey(0)
    kx, kp = jax.random.split(root)

    x = jax.random.normal(kx, (B, S, D), jnp.float32)
    pt_params = init_block_params(kp, D, mlp_dim)

    # bf16 weight storage + bf16 MXU operands; fp32 LN stats/softmax/residuals.
    params = prepare_params(pt_params, compute_dtype=jnp.bfloat16)
    out = encoder_block_apply(x, params, num_heads)
    out = jax.block_until_ready(out)

    assert out.shape == (B, S, D) and out.dtype == jnp.float32
    ref = encoder_block_reference(x, pt_params, num_heads)
    max_err = float(jnp.max(jnp.abs(out - ref)))
    assert max_err < 3e-2, f"max abs error vs reference too large: {max_err}"
    print("KERNEL_OK")
</pallas_src>

<mosaic_0001>
module attributes {stable_mosaic.version = 11 : i64} {
  func.func @encoder_block_kernel(%arg0: i32, %arg1: memref<1x8x32xf32, #tpu.memory_space<vmem>>, %arg2: memref<1x32xf32, #tpu.memory_space<vmem>>, %arg3: memref<1x32xf32, #tpu.memory_space<vmem>>, %arg4: memref<32x96xbf16, #tpu.memory_space<vmem>>, %arg5: memref<1x96xf32, #tpu.memory_space<vmem>>, %arg6: memref<32x32xbf16, #tpu.memory_space<vmem>>, %arg7: memref<1x32xf32, #tpu.memory_space<vmem>>, %arg8: memref<1x32xf32, #tpu.memory_space<vmem>>, %arg9: memref<1x32xf32, #tpu.memory_space<vmem>>, %arg10: memref<32x64xbf16, #tpu.memory_space<vmem>>, %arg11: memref<1x64xf32, #tpu.memory_space<vmem>>, %arg12: memref<64x32xbf16, #tpu.memory_space<vmem>>, %arg13: memref<1x32xf32, #tpu.memory_space<vmem>>, %arg14: memref<1x8x32xf32, #tpu.memory_space<vmem>>) attributes {dimension_semantics = [#tpu.dimension_semantics<parallel>], iteration_bounds = array<i64: 2>, scalar_prefetch = 0 : i64, scratch_operands = 0 : i64, tpu.core_type = #tpu.core_type<tc>, window_params = [{transform_indices = @transform_0, window_bounds = array<i64: 1, 8, 32>}, {pipeline_mode = #tpu.pipeline_mode<synchronous>, transform_indices = @transform_1, window_bounds = array<i64: 1, 32>}, {pipeline_mode = #tpu.pipeline_mode<synchronous>, transform_indices = @transform_2, window_bounds = array<i64: 1, 32>}, {pipeline_mode = #tpu.pipeline_mode<synchronous>, transform_indices = @transform_3, window_bounds = array<i64: 32, 96>}, {pipeline_mode = #tpu.pipeline_mode<synchronous>, transform_indices = @transform_4, window_bounds = array<i64: 1, 96>}, {pipeline_mode = #tpu.pipeline_mode<synchronous>, transform_indices = @transform_5, window_bounds = array<i64: 32, 32>}, {pipeline_mode = #tpu.pipeline_mode<synchronous>, transform_indices = @transform_6, window_bounds = array<i64: 1, 32>}, {pipeline_mode = #tpu.pipeline_mode<synchronous>, transform_indices = @transform_7, window_bounds = array<i64: 1, 32>}, {pipeline_mode = #tpu.pipeline_mode<synchronous>, transform_indices = @transform_8, window_bounds = array<i64: 1, 32>}, {pipeline_mode = #tpu.pipeline_mode<synchronous>, transform_indices = @transform_9, window_bounds = array<i64: 32, 64>}, {pipeline_mode = #tpu.pipeline_mode<synchronous>, transform_indices = @transform_10, window_bounds = array<i64: 1, 64>}, {pipeline_mode = #tpu.pipeline_mode<synchronous>, transform_indices = @transform_11, window_bounds = array<i64: 64, 32>}, {pipeline_mode = #tpu.pipeline_mode<synchronous>, transform_indices = @transform_12, window_bounds = array<i64: 1, 32>}, {transform_indices = @transform_13, window_bounds = array<i64: 1, 8, 32>}]} {
    %c0 = arith.constant 0 : index
    %c0_0 = arith.constant 0 : index
    %c0_1 = arith.constant 0 : index
    %0 = vector.load %arg1[%c0, %c0_0, %c0_1] : memref<1x8x32xf32, #tpu.memory_space<vmem>>, vector<1x8x32xf32>
    %1 = vector.shape_cast %0 : vector<1x8x32xf32> to vector<8x32xf32>
    %c0_2 = arith.constant 0 : index
    %c0_3 = arith.constant 0 : index
    %2 = vector.load %arg2[%c0_2, %c0_3] : memref<1x32xf32, #tpu.memory_space<vmem>>, vector<1x32xf32>
    %c0_4 = arith.constant 0 : index
    %c0_5 = arith.constant 0 : index
    %3 = vector.load %arg3[%c0_4, %c0_5] : memref<1x32xf32, #tpu.memory_space<vmem>>, vector<1x32xf32>
    %cst = arith.constant dense<0.000000e+00> : vector<8xf32>
    %4 = vector.multi_reduction <add>, %1, %cst [1] : vector<8x32xf32> to vector<8xf32>
    %5 = vector.shape_cast %4 : vector<8xf32> to vector<8x1xf32>
    %cst_6 = arith.constant 3.200000e+01 : f32
    %6 = vector.broadcast %cst_6 : f32 to vector<8x1xf32>
    %7 = arith.divf %5, %6 : vector<8x1xf32>
    %8 = vector.broadcast %7 : vector<8x1xf32> to vector<8x32xf32>
    %9 = arith.subf %1, %8 : vector<8x32xf32>
    %10 = arith.mulf %9, %9 : vector<8x32xf32>
    %cst_7 = arith.constant dense<0.000000e+00> : vector<8xf32>
    %11 = vector.multi_reduction <add>, %10, %cst_7 [1] : vector<8x32xf32> to vector<8xf32>
    %12 = vector.shape_cast %11 : vector<8xf32> to vector<8x1xf32>
    %cst_8 = arith.constant 3.200000e+01 : f32
    %13 = vector.broadcast %cst_8 : f32 to vector<8x1xf32>
    %14 = arith.divf %12, %13 : vector<8x1xf32>
    %cst_9 = arith.constant 9.99999997E-7 : f32
    %15 = vector.broadcast %cst_9 : f32 to vector<8x1xf32>
    %16 = arith.addf %14, %15 : vector<8x1xf32>
    %17 = math.rsqrt %16 : vector<8x1xf32>
    %18 = vector.broadcast %17 : vector<8x1xf32> to vector<8x32xf32>
    %19 = arith.mulf %9, %18 : vector<8x32xf32>
    %20 = vector.broadcast %2 : vector<1x32xf32> to vector<8x32xf32>
    %21 = arith.mulf %19, %20 : vector<8x32xf32>
    %22 = vector.broadcast %3 : vector<1x32xf32> to vector<8x32xf32>
    %23 = arith.addf %21, %22 : vector<8x32xf32>
    %24 = arith.truncf %23 : vector<8x32xf32> to vector<8x32xbf16>
    %c0_10 = arith.constant 0 : index
    %c0_11 = arith.constant 0 : index
    %25 = vector.load %arg4[%c0_10, %c0_11] : memref<32x96xbf16, #tpu.memory_space<vmem>>, vector<32x96xbf16>
    %cst_12 = arith.constant dense<0.000000e+00> : vector<8x96xf32>
    %26 = tpu.matmul %24, %25, %cst_12 {dimension_numbers = #tpu.dot_dimension_numbers<[1], [0], [0], [1], [0, 0, 1, 1], [], []>} : vector<8x32xbf16>, vector<32x96xbf16>, vector<8x96xf32> -> vector<8x96xf32>
    %c0_13 = arith.constant 0 : index
    %c0_14 = arith.constant 0 : index
    %27 = vector.load %arg5[%c0_13, %c0_14] : memref<1x96xf32, #tpu.memory_space<vmem>>, vector<1x96xf32>
    %28 = vector.broadcast %27 : vector<1x96xf32> to vector<8x96xf32>
    %29 = arith.addf %26, %28 : vector<8x96xf32>
    %30 = vector.extract_strided_slice %29 {offsets = [0, 0], sizes = [8, 32], strides = [1, 1]} : vector<8x96xf32> to vector<8x32xf32>
    %cst_15 = arith.constant 0.353553385 : f32
    %31 = vector.broadcast %cst_15 : f32 to vector<8x32xf32>
    %32 = arith.mulf %30, %31 : vector<8x32xf32>
    %33 = vector.extract_strided_slice %32 {offsets = [0, 0], sizes = [8, 8], strides = [1, 1]} : vector<8x32xf32> to vector<8x8xf32>
    %34 = vector.extract_strided_slice %32 {offsets = [0, 8], sizes = [8, 8], strides = [1, 1]} : vector<8x32xf32> to vector<8x8xf32>
    %35 = vector.extract_strided_slice %32 {offsets = [0, 16], sizes = [8, 8], strides = [1, 1]} : vector<8x32xf32> to vector<8x8xf32>
    %36 = vector.extract_strided_slice %32 {offsets = [0, 24], sizes = [8, 8], strides = [1, 1]} : vector<8x32xf32> to vector<8x8xf32>
    %37 = vector.shape_cast %33 : vector<8x8xf32> to vector<1x8x8xf32>
    %38 = vector.shape_cast %34 : vector<8x8xf32> to vector<1x8x8xf32>
    %39 = vector.shape_cast %35 : vector<8x8xf32> to vector<1x8x8xf32>
    %40 = vector.shape_cast %36 : vector<8x8xf32> to vector<1x8x8xf32>
    %41 = tpu.concatenate %37, %38, %39, %40 in 0 : vector<1x8x8xf32>, vector<1x8x8xf32>, vector<1x8x8xf32>, vector<1x8x8xf32> -> vector<4x8x8xf32>
    %42 = arith.truncf %41 : vector<4x8x8xf32> to vector<4x8x8xbf16>
    %43 = vector.extract_strided_slice %29 {offsets = [0, 32], sizes = [8, 32], strides = [1, 1]} : vector<8x96xf32> to vector<8x32xf32>
    %44 = vector.extract_strided_slice %43 {offsets = [0, 0], sizes = [8, 8], strides = [1, 1]} : vector<8x32xf32> to vector<8x8xf32>
    %45 = vector.extract_strided_slice %43 {offsets = [0, 8], sizes = [8, 8], strides = [1, 1]} : vector<8x32xf32> to vector<8x8xf32>
    %46 = vector.extract_strided_slice %43 {offsets = [0, 16], sizes = [8, 8], strides = [1, 1]} : vector<8x32xf32> to vector<8x8xf32>
    %47 = vector.extract_strided_slice %43 {offsets = [0, 24], sizes = [8, 8], strides = [1, 1]} : vector<8x32xf32> to vector<8x8xf32>
    %48 = vector.shape_cast %44 : vector<8x8xf32> to vector<1x8x8xf32>
    %49 = vector.shape_cast %45 : vector<8x8xf32> to vector<1x8x8xf32>
    %50 = vector.shape_cast %46 : vector<8x8xf32> to vector<1x8x8xf32>
    %51 = vector.shape_cast %47 : vector<8x8xf32> to vector<1x8x8xf32>
    %52 = tpu.concatenate %48, %49, %50, %51 in 0 : vector<1x8x8xf32>, vector<1x8x8xf32>, vector<1x8x8xf32>, vector<1x8x8xf32> -> vector<4x8x8xf32>
    %53 = arith.truncf %52 : vector<4x8x8xf32> to vector<4x8x8xbf16>
    %54 = vector.extract_strided_slice %29 {offsets = [0, 64], sizes = [8, 32], strides = [1, 1]} : vector<8x96xf32> to vector<8x32xf32>
    %55 = vector.extract_strided_slice %54 {offsets = [0, 0], sizes = [8, 8], strides = [1, 1]} : vector<8x32xf32> to vector<8x8xf32>
    %56 = vector.extract_strided_slice %54 {offsets = [0, 8], sizes = [8, 8], strides = [1, 1]} : vector<8x32xf32> to vector<8x8xf32>
    %57 = vector.extract_strided_slice %54 {offsets = [0, 16], sizes = [8, 8], strides = [1, 1]} : vector<8x32xf32> to vector<8x8xf32>
    %58 = vector.extract_strided_slice %54 {offsets = [0, 24], sizes = [8, 8], strides = [1, 1]} : vector<8x32xf32> to vector<8x8xf32>
    %59 = vector.shape_cast %55 : vector<8x8xf32> to vector<1x8x8xf32>
    %60 = vector.shape_cast %56 : vector<8x8xf32> to vector<1x8x8xf32>
    %61 = vector.shape_cast %57 : vector<8x8xf32> to vector<1x8x8xf32>
    %62 = vector.shape_cast %58 : vector<8x8xf32> to vector<1x8x8xf32>
    %63 = tpu.concatenate %59, %60, %61, %62 in 0 : vector<1x8x8xf32>, vector<1x8x8xf32>, vector<1x8x8xf32>, vector<1x8x8xf32> -> vector<4x8x8xf32>
    %64 = arith.truncf %63 : vector<4x8x8xf32> to vector<4x8x8xbf16>
    "tpu.trace_start"() <{level = 10 : i32, message = "hqd,hkd->hqk"}> : () -> ()
    %cst_16 = arith.constant dense<0.000000e+00> : vector<4x8x8xf32>
    %65 = tpu.matmul %42, %53, %cst_16 {dimension_numbers = #tpu.dot_dimension_numbers<[2], [2], [1], [1], [0, 0, 0, 1, 1, 1], [0], [0]>} : vector<4x8x8xbf16>, vector<4x8x8xbf16>, vector<4x8x8xf32> -> vector<4x8x8xf32>
    "tpu.trace_stop"() : () -> ()
    %cst_17 = arith.constant dense<0xFF800000> : vector<4x8xf32>
    %66 = vector.multi_reduction <maximumf>, %65, %cst_17 [2] : vector<4x8x8xf32> to vector<4x8xf32>
    %67 = vector.shape_cast %66 : vector<4x8xf32> to vector<4x8x1xf32>
    %68 = vector.broadcast %67 : vector<4x8x1xf32> to vector<4x8x8xf32>
    %69 = arith.subf %65, %68 : vector<4x8x8xf32>
    %70 = math.exp %69 : vector<4x8x8xf32>
    %cst_18 = arith.constant dense<0.000000e+00> : vector<4x8xf32>
    %71 = vector.multi_reduction <add>, %70, %cst_18 [2] : vector<4x8x8xf32> to vector<4x8xf32>
    %72 = vector.shape_cast %71 : vector<4x8xf32> to vector<4x8x1xf32>
    %73 = tpu.reciprocal %72 {approx = true} : vector<4x8x1xf32> -> vector<4x8x1xf32>
    %74 = vector.broadcast %73 : vector<4x8x1xf32> to vector<4x8x8xf32>
    %75 = arith.mulf %70, %74 : vector<4x8x8xf32>
    %76 = arith.truncf %75 : vector<4x8x8xf32> to vector<4x8x8xbf16>
    "tpu.trace_start"() <{level = 10 : i32, message = "hqk,hkd->hqd"}> : () -> ()
    %cst_19 = arith.constant dense<0.000000e+00> : vector<4x8x8xf32>
    %77 = tpu.matmul %76, %64, %cst_19 {dimension_numbers = #tpu.dot_dimension_numbers<[2], [1], [1], [2], [0, 0, 0, 1, 1, 2], [0], [0]>} : vector<4x8x8xbf16>, vector<4x8x8xbf16>, vector<4x8x8xf32> -> vector<4x8x8xf32>
    "tpu.trace_stop"() : () -> ()
    %78 = vector.extract_strided_slice %77 {offsets = [0, 0, 0], sizes = [1, 8, 8], strides = [1, 1, 1]} : vector<4x8x8xf32> to vector<1x8x8xf32>
    %79 = vector.shape_cast %78 : vector<1x8x8xf32> to vector<8x8xf32>
    %80 = vector.extract_strided_slice %77 {offsets = [1, 0, 0], sizes = [1, 8, 8], strides = [1, 1, 1]} : vector<4x8x8xf32> to vector<1x8x8xf32>
    %81 = vector.shape_cast %80 : vector<1x8x8xf32> to vector<8x8xf32>
    %82 = vector.extract_strided_slice %77 {offsets = [2, 0, 0], sizes = [1, 8, 8], strides = [1, 1, 1]} : vector<4x8x8xf32> to vector<1x8x8xf32>
    %83 = vector.shape_cast %82 : vector<1x8x8xf32> to vector<8x8xf32>
    %84 = vector.extract_strided_slice %77 {offsets = [3, 0, 0], sizes = [1, 8, 8], strides = [1, 1, 1]} : vector<4x8x8xf32> to vector<1x8x8xf32>
    %85 = vector.shape_cast %84 : vector<1x8x8xf32> to vector<8x8xf32>
    %86 = tpu.concatenate %79, %81, %83, %85 in 1 : vector<8x8xf32>, vector<8x8xf32>, vector<8x8xf32>, vector<8x8xf32> -> vector<8x32xf32>
    %87 = arith.truncf %86 : vector<8x32xf32> to vector<8x32xbf16>
    %c0_20 = arith.constant 0 : index
    %c0_21 = arith.constant 0 : index
    %88 = vector.load %arg6[%c0_20, %c0_21] : memref<32x32xbf16, #tpu.memory_space<vmem>>, vector<32x32xbf16>
    %cst_22 = arith.constant dense<0.000000e+00> : vector<8x32xf32>
    %89 = tpu.matmul %87, %88, %cst_22 {dimension_numbers = #tpu.dot_dimension_numbers<[1], [0], [0], [1], [0, 0, 1, 1], [], []>} : vector<8x32xbf16>, vector<32x32xbf16>, vector<8x32xf32> -> vector<8x32xf32>
    %c0_23 = arith.constant 0 : index
    %c0_24 = arith.constant 0 : index
    %90 = vector.load %arg7[%c0_23, %c0_24] : memref<1x32xf32, #tpu.memory_space<vmem>>, vector<1x32xf32>
    %91 = vector.broadcast %90 : vector<1x32xf32> to vector<8x32xf32>
    %92 = arith.addf %89, %91 : vector<8x32xf32>
    %93 = arith.addf %1, %92 : vector<8x32xf32>
    %c0_25 = arith.constant 0 : index
    %c0_26 = arith.constant 0 : index
    %94 = vector.load %arg8[%c0_25, %c0_26] : memref<1x32xf32, #tpu.memory_space<vmem>>, vector<1x32xf32>
    %c0_27 = arith.constant 0 : index
    %c0_28 = arith.constant 0 : index
    %95 = vector.load %arg9[%c0_27, %c0_28] : memref<1x32xf32, #tpu.memory_space<vmem>>, vector<1x32xf32>
    %cst_29 = arith.constant dense<0.000000e+00> : vector<8xf32>
    %96 = vector.multi_reduction <add>, %93, %cst_29 [1] : vector<8x32xf32> to vector<8xf32>
    %97 = vector.shape_cast %96 : vector<8xf32> to vector<8x1xf32>
    %cst_30 = arith.constant 3.200000e+01 : f32
    %98 = vector.broadcast %cst_30 : f32 to vector<8x1xf32>
    %99 = arith.divf %97, %98 : vector<8x1xf32>
    %100 = vector.broadcast %99 : vector<8x1xf32> to vector<8x32xf32>
    %101 = arith.subf %93, %100 : vector<8x32xf32>
    %102 = arith.mulf %101, %101 : vector<8x32xf32>
    %cst_31 = arith.constant dense<0.000000e+00> : vector<8xf32>
    %103 = vector.multi_reduction <add>, %102, %cst_31 [1] : vector<8x32xf32> to vector<8xf32>
    %104 = vector.shape_cast %103 : vector<8xf32> to vector<8x1xf32>
    %cst_32 = arith.constant 3.200000e+01 : f32
    %105 = vector.broadcast %cst_32 : f32 to vector<8x1xf32>
    %106 = arith.divf %104, %105 : vector<8x1xf32>
    %cst_33 = arith.constant 9.99999997E-7 : f32
    %107 = vector.broadcast %cst_33 : f32 to vector<8x1xf32>
    %108 = arith.addf %106, %107 : vector<8x1xf32>
    %109 = math.rsqrt %108 : vector<8x1xf32>
    %110 = vector.broadcast %109 : vector<8x1xf32> to vector<8x32xf32>
    %111 = arith.mulf %101, %110 : vector<8x32xf32>
    %112 = vector.broadcast %94 : vector<1x32xf32> to vector<8x32xf32>
    %113 = arith.mulf %111, %112 : vector<8x32xf32>
    %114 = vector.broadcast %95 : vector<1x32xf32> to vector<8x32xf32>
    %115 = arith.addf %113, %114 : vector<8x32xf32>
    %116 = arith.truncf %115 : vector<8x32xf32> to vector<8x32xbf16>
    %c0_34 = arith.constant 0 : index
    %c0_35 = arith.constant 0 : index
    %117 = vector.load %arg10[%c0_34, %c0_35] : memref<32x64xbf16, #tpu.memory_space<vmem>>, vector<32x64xbf16>
    %cst_36 = arith.constant dense<0.000000e+00> : vector<8x64xf32>
    %118 = tpu.matmul %116, %117, %cst_36 {dimension_numbers = #tpu.dot_dimension_numbers<[1], [0], [0], [1], [0, 0, 1, 1], [], []>} : vector<8x32xbf16>, vector<32x64xbf16>, vector<8x64xf32> -> vector<8x64xf32>
    %c0_37 = arith.constant 0 : index
    %c0_38 = arith.constant 0 : index
    %119 = vector.load %arg11[%c0_37, %c0_38] : memref<1x64xf32, #tpu.memory_space<vmem>>, vector<1x64xf32>
    %120 = vector.broadcast %119 : vector<1x64xf32> to vector<8x64xf32>
    %121 = arith.addf %118, %120 : vector<8x64xf32>
    %122 = arith.truncf %121 : vector<8x64xf32> to vector<8x64xbf16>
    %cst_39 = arith.constant 5.000000e-01 : bf16
    %123 = vector.broadcast %cst_39 : bf16 to vector<8x64xbf16>
    %124 = arith.mulf %122, %123 : vector<8x64xbf16>
    %cst_40 = arith.constant 7.070310e-01 : bf16
    %125 = vector.broadcast %cst_40 : bf16 to vector<8x64xbf16>
    %126 = arith.mulf %122, %125 : vector<8x64xbf16>
    %cst_41 = arith.constant 0.000000e+00 : bf16
    %127 = vector.broadcast %cst_41 : bf16 to vector<8x64xbf16>
    %128 = arith.cmpf olt, %126, %127 : vector<8x64xbf16>
    %cst_42 = arith.constant 0.000000e+00 : bf16
    %cst_43 = arith.constant 1.000000e+00 : bf16
    %129 = arith.subf %cst_42, %cst_43 : bf16
    %cst_44 = arith.constant 1.000000e+00 : bf16
    %130 = vector.broadcast %129 : bf16 to vector<8x64xbf16>
    %131 = vector.broadcast %cst_44 : bf16 to vector<8x64xbf16>
    %132 = arith.select %128, %130, %131 : vector<8x64xi1>, vector<8x64xbf16>
    %133 = math.absf %126 : vector<8x64xbf16>
    %cst_45 = arith.constant 3.281250e-01 : bf16
    %134 = vector.broadcast %cst_45 : bf16 to vector<8x64xbf16>
    %135 = arith.mulf %134, %133 : vector<8x64xbf16>
    %cst_46 = arith.constant 1.000000e+00 : bf16
    %136 = vector.broadcast %cst_46 : bf16 to vector<8x64xbf16>
    %137 = arith.addf %136, %135 : vector<8x64xbf16>
    %cst_47 = arith.constant 1.000000e+00 : bf16
    %138 = vector.broadcast %cst_47 : bf16 to vector<8x64xbf16>
    %139 = arith.divf %138, %137 : vector<8x64xbf16>
    %cst_48 = arith.constant 1.062500e+00 : bf16
    %140 = vector.broadcast %cst_48 : bf16 to vector<8x64xbf16>
    %141 = arith.mulf %140, %139 : vector<8x64xbf16>
    %cst_49 = arith.constant -1.453130e+00 : bf16
    %142 = vector.broadcast %cst_49 : bf16 to vector<8x64xbf16>
    %143 = arith.addf %141, %142 : vector<8x64xbf16>
    %144 = arith.mulf %143, %139 : vector<8x64xbf16>
    %cst_50 = arith.constant 1.421880e+00 : bf16
    %145 = vector.broadcast %cst_50 : bf16 to vector<8x64xbf16>
    %146 = arith.addf %144, %145 : vector<8x64xbf16>
    %147 = arith.mulf %146, %139 : vector<8x64xbf16>
    %cst_51 = arith.constant -2.851560e-01 : bf16
    %148 = vector.broadcast %cst_51 : bf16 to vector<8x64xbf16>
    %149 = arith.addf %147, %148 : vector<8x64xbf16>
    %150 = arith.mulf %149, %139 : vector<8x64xbf16>
    %cst_52 = arith.constant 2.539060e-01 : bf16
    %151 = vector.broadcast %cst_52 : bf16 to vector<8x64xbf16>
    %152 = arith.addf %150, %151 : vector<8x64xbf16>
    %153 = arith.mulf %152, %139 : vector<8x64xbf16>
    %cst_53 = arith.constant 0.000000e+00 : bf16
    %154 = vector.broadcast %cst_53 : bf16 to vector<8x64xbf16>
    %155 = arith.subf %154, %133 : vector<8x64xbf16>
    %156 = arith.mulf %155, %133 : vector<8x64xbf16>
    %157 = math.exp %156 : vector<8x64xbf16>
    %158 = arith.mulf %153, %157 : vector<8x64xbf16>
    %cst_54 = arith.constant 1.000000e+00 : bf16
    %159 = vector.broadcast %cst_54 : bf16 to vector<8x64xbf16>
    %160 = arith.subf %159, %158 : vector<8x64xbf16>
    %161 = arith.mulf %132, %160 : vector<8x64xbf16>
    %cst_55 = arith.constant 1.000000e+00 : bf16
    %162 = vector.broadcast %cst_55 : bf16 to vector<8x64xbf16>
    %163 = arith.addf %162, %161 : vector<8x64xbf16>
    %164 = arith.mulf %124, %163 : vector<8x64xbf16>
    %c0_56 = arith.constant 0 : index
    %c0_57 = arith.constant 0 : index
    %165 = vector.load %arg12[%c0_56, %c0_57] : memref<64x32xbf16, #tpu.memory_space<vmem>>, vector<64x32xbf16>
    %cst_58 = arith.constant dense<0.000000e+00> : vector<8x32xf32>
    %166 = tpu.matmul %164, %165, %cst_58 {dimension_numbers = #tpu.dot_dimension_numbers<[1], [0], [0], [1], [0, 0, 1, 1], [], []>} : vector<8x64xbf16>, vector<64x32xbf16>, vector<8x32xf32> -> vector<8x32xf32>
    %c0_59 = arith.constant 0 : index
    %c0_60 = arith.constant 0 : index
    %167 = vector.load %arg13[%c0_59, %c0_60] : memref<1x32xf32, #tpu.memory_space<vmem>>, vector<1x32xf32>
    %168 = vector.broadcast %167 : vector<1x32xf32> to vector<8x32xf32>
    %169 = arith.addf %166, %168 : vector<8x32xf32>
    %170 = arith.addf %93, %169 : vector<8x32xf32>
    %171 = vector.shape_cast %170 : vector<8x32xf32> to vector<1x8x32xf32>
    %c0_61 = arith.constant 0 : index
    %c0_62 = arith.constant 0 : index
    %c0_63 = arith.constant 0 : index
    %172 = vector.load %arg14[%c0_61, %c0_62, %c0_63] : memref<1x8x32xf32, #tpu.memory_space<vmem>>, vector<1x8x32xf32>
    tpu.vector_store %arg14[%c0_61, %c0_62, %c0_63], %171 {strides = array<i32>} : memref<1x8x32xf32, #tpu.memory_space<vmem>>, vector<1x8x32xf32>,
    return
  }
  func.func @transform_0(%arg0: i32) -> (i32, i32, i32) {
    %c0_i32 = arith.constant 0 : i32
    %c0_i32_0 = arith.constant 0 : i32
    %c0_i32_1 = arith.constant 0 : i32
    return %arg0, %c0_i32, %c0_i32_0 : i32, i32, i32
  }
  func.func @transform_1(%arg0: i32) -> (i32, i32) {
    %c0_i32 = arith.constant 0 : i32
    %c0_i32_0 = arith.constant 0 : i32
    %c0_i32_1 = arith.constant 0 : i32
    return %c0_i32, %c0_i32_0 : i32, i32
  }
  func.func @transform_2(%arg0: i32) -> (i32, i32) {
    %c0_i32 = arith.constant 0 : i32
    %c0_i32_0 = arith.constant 0 : i32
    %c0_i32_1 = arith.constant 0 : i32
    return %c0_i32, %c0_i32_0 : i32, i32
  }
  func.func @transform_3(%arg0: i32) -> (i32, i32) {
    %c0_i32 = arith.constant 0 : i32
    %c0_i32_0 = arith.constant 0 : i32
    %c0_i32_1 = arith.constant 0 : i32
    return %c0_i32, %c0_i32_0 : i32, i32
  }
  func.func @transform_4(%arg0: i32) -> (i32, i32) {
    %c0_i32 = arith.constant 0 : i32
    %c0_i32_0 = arith.constant 0 : i32
    %c0_i32_1 = arith.constant 0 : i32
    return %c0_i32, %c0_i32_0 : i32, i32
  }
  func.func @transform_5(%arg0: i32) -> (i32, i32) {
    %c0_i32 = arith.constant 0 : i32
    %c0_i32_0 = arith.constant 0 : i32
    %c0_i32_1 = arith.constant 0 : i32
    return %c0_i32, %c0_i32_0 : i32, i32
  }
  func.func @transform_6(%arg0: i32) -> (i32, i32) {
    %c0_i32 = arith.constant 0 : i32
    %c0_i32_0 = arith.constant 0 : i32
    %c0_i32_1 = arith.constant 0 : i32
    return %c0_i32, %c0_i32_0 : i32, i32
  }
  func.func @transform_7(%arg0: i32) -> (i32, i32) {
    %c0_i32 = arith.constant 0 : i32
    %c0_i32_0 = arith.constant 0 : i32
    %c0_i32_1 = arith.constant 0 : i32
    return %c0_i32, %c0_i32_0 : i32, i32
  }
  func.func @transform_8(%arg0: i32) -> (i32, i32) {
    %c0_i32 = arith.constant 0 : i32
    %c0_i32_0 = arith.constant 0 : i32
    %c0_i32_1 = arith.constant 0 : i32
    return %c0_i32, %c0_i32_0 : i32, i32
  }
  func.func @transform_9(%arg0: i32) -> (i32, i32) {
    %c0_i32 = arith.constant 0 : i32
    %c0_i32_0 = arith.constant 0 : i32
    %c0_i32_1 = arith.constant 0 : i32
    return %c0_i32, %c0_i32_0 : i32, i32
  }
  func.func @transform_10(%arg0: i32) -> (i32, i32) {
    %c0_i32 = arith.constant 0 : i32
    %c0_i32_0 = arith.constant 0 : i32
    %c0_i32_1 = arith.constant 0 : i32
    return %c0_i32, %c0_i32_0 : i32, i32
  }
  func.func @transform_11(%arg0: i32) -> (i32, i32) {
    %c0_i32 = arith.constant 0 : i32
    %c0_i32_0 = arith.constant 0 : i32
    %c0_i32_1 = arith.constant 0 : i32
    return %c0_i32, %c0_i32_0 : i32, i32
  }
  func.func @transform_12(%arg0: i32) -> (i32, i32) {
    %c0_i32 = arith.constant 0 : i32
    %c0_i32_0 = arith.constant 0 : i32
    %c0_i32_1 = arith.constant 0 : i32
    return %c0_i32, %c0_i32_0 : i32, i32
  }
  func.func @transform_13(%arg0: i32) -> (i32, i32, i32) {
    %c0_i32 = arith.constant 0 : i32
    %c0_i32_0 = arith.constant 0 : i32
    %c0_i32_1 = arith.constant 0 : i32
    return %arg0, %c0_i32, %c0_i32_0 : i32, i32, i32
  }
}

</mosaic_0001>

<bundles_post_ra>
// kernel: tpu_custom_call.1
= control target key start
LH: loop header
LB: loop body
LE: loop exit
PB: predicated region body
PF: predicated region fallthrough
CT: control target
= control target key end

     0   :  { %s2341_s0 = inlined_call_operand.vmem [shape: f32[2,8,32], index: 0, kind: input, shape index: {}]   ;;  %s2342_s1 = inlined_call_operand.vmem [shape: f32[1,32], index: 1, kind: input, shape index: {}]   ;;  %s2343_s2 = inlined_call_operand.vmem [shape: f32[1,32], index: 2, kind: input, shape index: {}]   ;;  %s2344_s3 = inlined_call_operand.vmem [shape: bf16[32,96], index: 3, kind: input, shape index: {}]   ;;  %s2345_s4 = inlined_call_operand.vmem [shape: f32[1,96], index: 4, kind: input, shape index: {}]   ;;  %s2346_s5 = inlined_call_operand.vmem [shape: bf16[32,32], index: 5, kind: input, shape index: {}]   ;;  %s2347_s6 = inlined_call_operand.vmem [shape: f32[1,32], index: 6, kind: input, shape index: {}]   ;;  %s2348_s7 = inlined_call_operand.hbm [shape: f32[1,32], index: 7, kind: input, shape index: {}]   ;;  %s2349_s8 = inlined_call_operand.hbm [shape: f32[1,32], index: 8, kind: input, shape index: {}]   ;;  %s2350_s9 = inlined_call_operand.hbm [shape: bf16[32,64], index: 9, kind: input, shape index: {}]   ;;  %s2351_s10 = inlined_call_operand.hbm [shape: f32[1,64], index: 10, kind: input, shape index: {}]   ;;  %s2352_s11 = inlined_call_operand.vmem [shape: bf16[64,32], index: 11, kind: input, shape index: {}]   ;;  %s2353_s12 = inlined_call_operand.vmem [shape: f32[1,32], index: 12, kind: input, shape index: {}]   ;;  %s2354_s13 = inlined_call_operand.hbm [shape: f32[2,8,32], index: 13, kind: output, shape index: {}]  }
   0x1   :  { %2360 = sst [smem:[#allocation18_spill]] %s2348_s7 }
   0x2   :  { %18 = vsyncpa [#allocation3], 0 }
   0x3   :  { %19 = vsyncpa [#allocation6], 0 }
   0x4   :  { %20 = vsyncpa [#allocation9], 0 }
   0x5   :  { %21 = vsyncpa [#allocation4], 0 }
   0x6   :  { %23 = vsyncpa [#allocation4 + $0x1], 0  ;;  %s2030_s25 = smov 0   ;;  %s2032_s26 = smov 0  }
   0x7   :  { %s2034_s27 = smov 0   ;;  %s2036_s28 = smov 0  }
   0x8 LB: > { %2361 = sst [smem:[#allocation15_spill]] %s1936_s27  ;;  %s2051_s29 = sadd.s32 4294967295, %s1940_s28   ;;  %s1940_s28 = sphi %s2036_s28, %s2377_s28   ;;  %s1936_s27 = sphi %s2034_s27, %s2379_s27   ;;  %s1932_s26 = sphi %s2032_s26, %s2381_s26   ;;  %s1928_s25 = sphi %s2030_s25, %s2380_s25  }
   0x9   : > { %s1475_s30 = sadd.s32 4294967294, %s1940_s28   ;;  %s2055_s14 = sadd.s32 1, %s1940_s28  }
   0xa   : > { %2362 = sst [smem:[#allocation16_spill]] %s2055_s14  ;;  %s314_s15 = sadd.s32 1, %s1936_s27 }
   0xb   : > { %s311_s16 = ssub.s32 %s1940_s28, %s2055_s14  ;;  %p324_p0 = scmp.ne.s32.totalorder %s1936_s27, %s1932_s26 }
   0xc   : > { %p312_p1 = scmp.eq.s32.totalorder %s311_s16, 0  ;;  %p325_p2 = scmp.eq.s32.totalorder %s2051_s29, 1 }
   0xd   : > { %p330_p3 = scmp.ne.s32.totalorder %s1932_s26, %s1928_s25  ;;  %p331_p4 = scmp.eq.s32.totalorder %s1475_s30, 1 }
   0xe   : > { %s2066_s17 = scalar_select %p312_p1, %s1936_s27, %s314_s15  }
   0xf   : > { %p2068_p5 = por %p325_p2, %p324_p0  ;;  %p2072_p6 = por %p331_p4, %p330_p3 }
  0x10   : > { %2363 = sst [smem:[#allocation17_spill]] %s2066_s17  ;;  %p1476_p7 = scmp.ge.s32.totalorder %s1940_s28, 1 }
  0x11   : > { %s2364_s18 = scalar_select %p2068_p5, 1, 0 }
  0x12   : > { %s2365_s19 = scalar_select %p2072_p6, 1, 0 }
  0x13   : > { %p338_p8 = scmp.lt.s32.totalorder %s1940_s28, 3  ;;  %p2356_p9 = scmp.eq.s32.totalorder %s2051_s29, 0 }
  0x14   : > { %s1942_s21 = smov [#allocation5]   ;;  %s1943_s23 = smov [#allocation2]  }
  0x15   : > { %p2079_p10 = pnand %p1476_p7, %p338_p8  ;;  %s380_s22 = sshll.u32 %s1942_s21, 4  ;;  %s381_s22 = int_to_ptr.vmem [resolvable:$true] %s380_s22 }
  0x16   : > { %s369_s24 = sshll.u32 %s1943_s23, 4  ;;  %s1944_s15 = smov [#allocation7]   ;;  %s370_s24 = int_to_ptr.vmem [resolvable:$true] %s369_s24 }
  0x17   : > { %p1655_p11 = pneg %p2079_p10  ;;  %s390_s16 = sshll.u32 %s1944_s15, 4  ;;  %s2091_s16 = int_to_ptr.vmem [resolvable:$true] %s390_s16 }
  0x18   : > { %s1775_s21 = scalar_lea.vmem %s381_s22, 16  ;;  %s1782_s23 = scalar_lea.vmem %s381_s22, 32 }
  0x19   : > { %p2087_p12 = pnand %p2356_p9, %p1655_p11  ;;  %p1776_p0 = scmp.ne.s32.totalorder %s381_s22, %s1775_s21 }
  0x1a   : > { %p1783_p3 = scmp.lt.s32.totalorder %s381_s22, %s381_s22  ;;  %p1784_p4 = scmp.lt.s32.totalorder %s1782_s23, %s1775_s21 }
  0x1b   : > { %p1766_p13 = pneg %p2087_p12 }
  0x1c   : > { %p1785_p7 = por %p1784_p4, %p1783_p3 }
  0x1d   : > { %p1778_p1 = pnand %p1776_p0, %p1766_p13 }
  0x1f   : > { %p1779_p2 = pneg %p1778_p1 }
  0x21   : > { %p1786_p8 = pnand %p1785_p7, %p1779_p2 }
  0x23   : > { %1789 = shalt.err (!%p1786_p8)
}
  0x24   : > { %1661 = dma.hbm_to_vmem [thread:$0]  (!%p2087_p12), %s2349_s8, 16, %s381_s22, [#allocation6]  }
  0x25   : > { %s1801_s27 = scalar_lea.vmem %s370_s24, 16  ;;  %s1808_s14 = scalar_lea.vmem %s370_s24, 32 }
  0x26   : > { %p1802_p11 = scmp.ne.s32.totalorder %s370_s24, %s1801_s27  ;;  %p1809_p1 = scmp.lt.s32.totalorder %s370_s24, %s370_s24 }
  0x27   : > { %p1810_p6 = scmp.lt.s32.totalorder %s1808_s14, %s1801_s27 }
  0x28   : > { %p1804_p9 = pnand %p1802_p11, %p1766_p13 }
  0x29   : > { %p1811_p5 = por %p1810_p6, %p1809_p1 }
  0x2a   : > { %p1805_p0 = pneg %p1804_p9 }
  0x2c   : > { %p1812_p3 = pnand %p1811_p5, %p1805_p0 }
  0x2e   : > { %1815 = shalt.err (!%p1812_p3)
}
  0x2f   : > { %s2368_s7 = sld [smem:[#allocation18_spill]]  ;;  %s1827_s17 = scalar_lea.vmem %s2091_s16, 256 }
  0x30   : > { %p1828_p2 = scmp.ne.s32.totalorder %s2091_s16, %s1827_s17  ;;  %p1835_p6 = scmp.lt.s32.totalorder %s2091_s16, %s2091_s16 }
  0x31   : > { %p1836_p5 = scmp.lt.s32.totalorder %s1827_s17, %s1827_s17 }
  0x32   : > { %p1830_p9 = pnand %p1828_p2, %p1766_p13 }
  0x33   : > { %p1837_p7 = por %p1836_p5, %p1835_p6 }
  0x34   : > { %p1831_p4 = pneg %p1830_p9 }
  0x35   : > { %1658 = dma.hbm_to_vmem [thread:$0]  (!%p2087_p12), %s2368_s7, 16, %s370_s24, [#allocation3]  }
  0x36   : > { %p1838_p8 = pnand %p1837_p7, %p1831_p4 }
  0x38   : > { %1841 = shalt.err (!%p1838_p8)
}
  0x39   : > { %s1945_s27 = smov 64   ;;  %s1946_s14 = smov 4  }
  0x3a   : > { %1664 = dma.hbm_to_vmem [thread:$0]  (!%p2087_p12), %s2350_s9, 256, %s2091_s16, [#allocation6], %s1945_s27, %s1945_s27, %s1946_s14  }
  0x3b   : > { %s1947_s15 = smov [#allocation8]  }
  0x3c   : > { %s404_s21 = sshll.u32 %s1947_s15, 4  ;;  %s405_s21 = int_to_ptr.vmem [resolvable:$true] %s404_s21 }
  0x3d   : > { %s1853_s23 = scalar_lea.vmem %s405_s21, 16  ;;  %s1860_s17 = scalar_lea.vmem %s405_s21, 32 }
  0x3e   : > { %p1854_p11 = scmp.ne.s32.totalorder %s405_s21, %s1853_s23  ;;  %p1861_p3 = scmp.lt.s32.totalorder %s405_s21, %s405_s21 }
  0x3f   : > { %p1862_p2 = scmp.lt.s32.totalorder %s1860_s17, %s1853_s23 }
  0x40   : > { %p1856_p0 = pnand %p1854_p11, %p1766_p13 }
  0x41   : > { %p1863_p9 = por %p1862_p2, %p1861_p3 }
  0x42   : > { %p1857_p1 = pneg %p1856_p0 }
  0x44   : > { %p1864_p4 = pnand %p1863_p9, %p1857_p1 }
  0x46   : > { %1867 = shalt.err (!%p1864_p4)
}
  0x47   : > { %1667 = dma.hbm_to_vmem [thread:$0]  (!%p2087_p12), %s2351_s10, 16, %s405_s21, [#allocation9]  }
  0x48   : > { %430 = sbr.rel (%p2079_p10) target bundleno = 2630 (0xa46), region = 72  ;;  %p2369_p6 = scmp.eq.s32.totalorder (!%p2079_p10), %s2051_s29, 0 }
  0x4d   : > { %1911 = dma.done.wait (%p2369_p6), [#allocation3], 16   ;;  %p2370_p13 = pmov %p2369_p6 }
  0x4e   : > { %p2371_p5 = pmov %p2369_p6 }
  0x4f   : > { %1913 = vsyncadd (%p2370_p13), [#allocation3], 4294967280 }
  0x50   : > { %1915 = dma.done.wait (%p2371_p5), [#allocation6], 272   ;;  %p2372_p7 = pmov %p2371_p5 }
  0x51   : > { %p2373_p8 = pmov %p2371_p5 }
  0x52   : > { %1917 = vsyncadd (%p2372_p7), [#allocation6], 4294967024 }
  0x53   : > { %1919 = dma.done.wait (%p2373_p8), [#allocation9], 16   ;;  %p2374_p12 = pmov %p2371_p5 }
  0x54   : > { %p485_p10 = scmp.lt.s32.totalorder %s2051_s29, 1  ;;  %vm503_vm0 = vcmask 261120   ;;  %v1730_v7 = vld [vmem:[%s2344_s3 + $0x8] sm:$0xff]   ;;  %v1948_v8 = vmov 0.0   ;;  %vm1949_vm1 = vmmov 0   ;;  %v1731_v9 = vld [vmem:[%s2344_s3] sm:$0xff]  }
  0x55   : > { %1921 = vsyncadd (%p2374_p12), [#allocation9], 4294967280  ;;  %1553 = vmatprep.subr.bf16.mxu0 %v1948_v8  ;;  %1557 = vmatprep.mubr.msk.bf16.mxu0 %vm1949_vm1, %v1948_v8  ;;  %v1489_v14 = vld [vmem:[%s2342_s1] ss:$0 sm:$0xff]  ;;  %s1950_s16 = smov 104   ;;  %s1952_s14 = smov 112  }
  0x56   : > { %s486_s7 = scalar_select %p485_p10, %s2051_s29, 1  ;;  %1554 = vmatpush3.bf16.msra.mxu0 %v1730_v7  ;;  %1561 = vmatprep.subr.bf16.mxu1 %v1948_v8  ;;  %v1490_v16 = vld [vmem:[%s2343_s2] ss:$0 sm:$0xff]  ;;  %vm631_vm2 = vcmask 64512   ;;  %vm878_vm3 = vcmask 1043456   ;;  %vm1079_vm4 = vcmask 130048  }
  0x57   : > { %1555 = vmatprep.subr.bf16.mxu0 %v1948_v8  ;;  %1563 = vmatprep.mubr.msk.bf16.mxu1 %vm1949_vm1, %v1948_v8  ;;  %v1491_v20 = vld [vmem:[%s2345_s4] ss:$0 sm:$0xff]  ;;  %s1953_s24 = smov 96   ;;  %s1954_s15 = smov 64   ;;  %vm1081_vm5 = vcmask 195584   ;;  %vm1315_vm7 = vcmask 523264  }
  0x58   : > { %s1488_s20 = sshll.u32 %s486_s7, 3  ;;  %s1955_s7 = smov 8  }
  0x59   : > { %s488_s27 = scalar_lea.vmem %s2341_s0, %s1488_s20  ;;  %s1956_s20 = smov 16  }
  0x5a   : > { %v2151_v0 = vld [vmem:[%s488_s27] sm:$0xff]  ;;  %1556 = vmatpush3.bf16.msra.mxu0 %v1731_v9  ;;  %s1951_s27 = smov 120   ;;  %s1957_s30 = smov 24  }
  0x5b   : > { %v504_v1 = vsel %vm503_vm0, %v2151_v0, 0.0  ;;  %1567 = vmatprep.subr.bf16.mxu0 %v1948_v8  ;;  %p2375_p0 = scmp.ne.s32.totalorder %s2364_s18, 0 }
  0x5c   : > { %505 = vadd.xlane.f32.xlu0 %v504_v1 }
  0xe5   : > { %v506_v2 = vpop.xlane.xlu0 %505 }
  0xe6   : > { %v508_v3 = vmul.f32 0.03125, %v506_v2 }
  0xe8   : > { %v509_v4 = vsub.f32 %v2151_v0, %v508_v3 }
  0xea   : > { %v510_v5 = vmul.f32 %v509_v4, %v509_v4 }
  0xec   : > { %v511_v6 = vsel %vm503_vm0, %v510_v5, 0.0 }
  0xed   : > { %512 = vadd.xlane.f32.xlu0 %v511_v6 }
 0x176   : > { %v513_v10 = vpop.xlane.xlu0 %512 }
 0x177   : > { %v514_v11 = vmul.f32 0.03125, %v513_v10 }
 0x179   : > { %v515_v12 = vadd.f32 1e-06, %v514_v11 }
 0x17b   : > { %1740 = vrsqrt.f32 %v515_v12 }
 0x188   : > { %v1741_v13 = vpop.eup %1740 }
 0x189   : > { %v517_v15 = vmul.f32 %v1741_v13, %v509_v4 }
 0x18b   : > { %v524_v17 = vmul.f32 %v1489_v14, %v517_v15 }
 0x18d   : > { %v531_v18 = vadd.f32 %v1490_v16, %v524_v17 }
 0x18f   : > { %v532_v19 = vpack.c.bf16 %v531_v18, %v531_v18 }
 0x191   : > { %1558 = vmatmul.mubr.msk.bf16.vlgmr.msra.gmra.mxu0 %vm503_vm0, %v532_v19 }
 0x192   : > { %1569 = vmatprep.mubr.msk.bf16.mxu0 %vm1949_vm1, %v1948_v8 }
 0x251   : > { %v593_v21 = vpop.f32.mrf.mxu0 }
 0x252   : > { %v594_v22 = vadd.f32 %v1491_v20, %v593_v21 }
 0x253   : > { %v1559_v23 = vpop.f32.mrf.mxu0 }
 0x254   : > { %621 = vrot.lane.b32.xlu0 %v594_v22, %s1950_s16  ;;  %615 = vrot.lane.b32.xlu1 %v594_v22, %s1951_s27  ;;  %v599_v25 = vmul.f32 0.35355338, %v594_v22  ;;  %v2183_v27 = vpack.c.bf16 %v594_v22, %v594_v22 }
 0x255   : > { %v596_v24 = vpop.f32.mrf.mxu0 }
 0x256   : > { %v610_v36 = vpack.c.bf16 %v599_v25, %v599_v25 }
 0x257   : > { %v1560_v26 = vpop.f32.mrf.mxu0 }
 0x258   : > { %618 = vrot.lane.b32.xlu1 %v594_v22, %s1952_s14  ;;  %607 = vrot.lane.b32.xlu0 %v599_v25, %s1950_s16 }
 0x25c   : > { %629 = vrot.lane.b32.xlu1 %v2183_v27, %s1953_s24 }
 0x260   : > { %601 = vrot.lane.b32.xlu1 %v599_v25, %s1951_s27 }
 0x2c6   : > { %v616_v28 = vpop.permute.xlu1 %615  ;;  %v622_v32 = vpop.permute.xlu0 %621 }
 0x2c7   : > { %v2186_v29 = vpack.c.bf16 %v616_v28, %v616_v28  ;;  %v2192_v34 = vpack.c.bf16 %v622_v32, %v622_v32 }
 0x2c9   : > { %679 = vrot.lane.b32.xlu1 %v2186_v29, %s1953_s24 }
 0x2ca   : > { %v619_v30 = vpop.permute.xlu1 %618  ;;  %v608_v45 = vpop.permute.xlu0 %607 }
 0x2cb   : > { %v2189_v31 = vpack.c.bf16 %v619_v30, %v619_v30  ;;  %v613_v48 = vpack.c.bf16 %v608_v45, %v608_v45 }
 0x2cd   : > { %728 = vrot.lane.b32.xlu1 %v2189_v31, %s1953_s24 }
 0x2ce   : > { %v630_v33 = vpop.permute.xlu1 %629 }
 0x2cf   : > { %v636_v35 = vsel %vm631_vm2, %v630_v33, 0 }
 0x2d0   : > { %1562 = vmatpush3.bf16.xpose.msra.mxu1 %v636_v35 }
 0x2d1   : > { %777 = vrot.lane.b32.xlu1 %v2192_v34, %s1953_s24  ;;  %1573 = vmatprep.subr.bf16.mxu1 %v1948_v8 }
 0x2d2   : > { %v602_v37 = vpop.permute.xlu1 %601 }
 0x2d3   : > { %v611_v42 = vpack.c.bf16 %v602_v37, %v602_v37 }
 0x2d5   : > { %604 = vrot.lane.b32.xlu1 %v599_v25, %s1952_s14  ;;  %s1520_s14 = sshll.u32 %s2051_s29, 7 }
 0x2d6   : > { %s2299_s17 = scalar_lea.hbm %s2354_s13, %s1520_s14 }
 0x2d7   : > { %1564 = vmatmul.mubr.msk.bf16.vlgmr.msra.gmra.mxu1 %vm631_vm2, %v610_v36 }
 0x2d8   : > { %1575 = vmatprep.mubr.msk.bf16.mxu1 %vm1949_vm1, %v1948_v8 }
 0x33b   : > { %v680_v38 = vpop.permute.xlu1 %679 }
 0x33c   : > { %v685_v39 = vsel %vm631_vm2, %v680_v38, 0 }
 0x33d   : > { %1568 = vmatpush3.bf16.xpose.msra.mxu0 %v685_v39 }
 0x33e   : > { %1579 = vmatprep.subr.bf16.mxu0 %v1948_v8 }
 0x33f   : > { %v729_v40 = vpop.permute.xlu1 %728 }
 0x340   : > { %v734_v41 = vsel %vm631_vm2, %v729_v40, 0 }
 0x341   : > { %1574 = vmatpush3.bf16.xpose.msra.mxu1 %v734_v41 }
 0x342   : > { %1585 = vmatprep.subr.bf16.mxu1 %v1948_v8 }
 0x343   : > { %v778_v43 = vpop.permute.xlu1 %777 }
 0x344   : > { %v783_v44 = vsel %vm631_vm2, %v778_v43, 0  ;;  %1570 = vmatmul.mubr.msk.bf16.vlgmr.msra.gmra.mxu0 %vm631_vm2, %v611_v42 }
 0x345   : > { %1580 = vmatpush3.bf16.xpose.msra.mxu0 %v783_v44  ;;  %1581 = vmatprep.mubr.msk.bf16.mxu0 %vm1949_vm1, %v1948_v8 }
 0x346   : > { %1591 = vmatprep.subr.bf16.mxu0 %v1948_v8 }
 0x347   : > { %v605_v46 = vpop.permute.xlu1 %604 }
 0x348   : > { %v612_v47 = vpack.c.bf16 %v605_v46, %v605_v46 }
 0x34a   : > { %1576 = vmatmul.mubr.msk.bf16.vlgmr.msra.gmra.mxu1 %vm631_vm2, %v612_v47 }
 0x34b   : > { %1587 = vmatprep.mubr.msk.bf16.mxu1 %vm1949_vm1, %v1948_v8 }
 0x34c   : > { %1582 = vmatmul.mubr.msk.bf16.vlgmr.msra.gmra.mxu0 %vm631_vm2, %v613_v48 }
 0x34d   : > { %1593 = vmatprep.mubr.msk.bf16.mxu0 %vm1949_vm1, %v1948_v8 }
 0x397   : > { %v672_v49 = vpop.f32.mrf.mxu1 }
 0x398   : > { %v825_v50 = vsel %vm631_vm2, %v672_v49, -inf }
 0x399   : > { %826 = vmax.xlane.f32.xlu1 %v825_v50  ;;  %v1565_v51 = vpop.f32.mrf.mxu1 }
 0x39b   : > { %v675_v52 = vpop.f32.mrf.mxu1 }
 0x39d   : > { %v1566_v53 = vpop.f32.mrf.mxu1 }
 0x404   : > { %v721_v54 = vpop.f32.mrf.mxu0 }
 0x405   : > { %v828_v55 = vsel %vm631_vm2, %v721_v54, -inf }
 0x406   : > { %829 = vmax.xlane.f32.xlu0 %v828_v55  ;;  %v1571_v56 = vpop.f32.mrf.mxu0  ;;  %v1732_v55 = vld [vmem:[%s2346_s5 + $0x8] sm:$0xff]  }
 0x407   : > { %v1733_v56 = vld [vmem:[%s2346_s5] sm:$0xff]  }
 0x408   : > { %v724_v57 = vpop.f32.mrf.mxu0 }
 0x40a   : > { %v1572_v58 = vpop.f32.mrf.mxu0  ;;  %v770_v59 = vpop.f32.mrf.mxu1 }
 0x40b   : > { %v831_v60 = vsel %vm631_vm2, %v770_v59, -inf }
 0x40c   : > { %v1577_v61 = vpop.f32.mrf.mxu1  ;;  %832 = vmax.xlane.f32.xlu0 %v831_v60  ;;  %v819_v62 = vpop.f32.mrf.mxu0 }
 0x40d   : > { %v834_v63 = vsel %vm631_vm2, %v819_v62, -inf }
 0x40e   : > { %v773_v1 = vpop.f32.mrf.mxu1  ;;  %835 = vmax.xlane.f32.xlu1 %v834_v63  ;;  %v1583_v2 = vpop.f32.mrf.mxu0 }
 0x410   : > { %v1578_v3 = vpop.f32.mrf.mxu1  ;;  %v822_v4 = vpop.f32.mrf.mxu0 }
 0x412   : > { %v1584_v5 = vpop.f32.mrf.mxu0 }
 0x41f   : > { %922 = vrot.lane.b32.xlu1 %v2186_v29, %s1954_s15 }
 0x422   : > { %873 = vrot.lane.b32.xlu0 %v2183_v27, %s1954_s15  ;;  %v827_v6 = vpop.xlane.xlu1 %826 }
 0x423   : > { %v837_v7 = vsub.f32 %v672_v49, %v827_v6 }
 0x425   : > { %v841_v9 = vmul.f32 1.442695, %v837_v7 }
 0x427   : > { %1742 = vpow2.f32 %v841_v9 }
 0x434   : > { %v1743_v10 = vpop.eup %1742 }
 0x435   : > { %v849_v11 = vsel %vm631_vm2, %v1743_v10, 0.0 }
 0x441   : > { %850 = vadd.xlane.f32.xlu0 %v849_v11 }
 0x48f   : > { %v830_v12 = vpop.xlane.xlu0 %829 }
 0x490   : > { %v838_v13 = vsub.f32 %v721_v54, %v830_v12 }
 0x492   : > { %v843_v14 = vmul.f32 1.442695, %v838_v13 }
 0x494   : > { %1744 = vpow2.f32 %v843_v14  ;;  %v1503_v14 = vld [vmem:[%s2347_s6] ss:$0 sm:$0xff] }
 0x495   : > { %v833_v15 = vpop.xlane.xlu0 %832 }
 0x496   : > { %v839_v16 = vsub.f32 %v770_v59, %v833_v15 }
 0x497   : > { %v836_v17 = vpop.xlane.xlu1 %835 }
 0x498   : > { %v845_v18 = vmul.f32 1.442695, %v839_v16  ;;  %v840_v19 = vsub.f32 %v819_v62, %v836_v17 }
 0x499   : > { %v874_v20 = vpop.permute.xlu0 %873 }
 0x49a   : > { %1746 = vpow2.f32 %v845_v18  ;;  %v847_v21 = vmul.f32 1.442695, %v840_v19  ;;  %v880_v22 = vsel %vm878_vm3, %v874_v20, 0 }
 0x49b   : > { %1586 = vmatpush3.bf16.msra.mxu1 %v880_v22  ;;  %v923_v23 = vpop.permute.xlu1 %922 }
 0x49c   : > { %1748 = vpow2.f32 %v847_v21  ;;  %v928_v24 = vsel %vm878_vm3, %v923_v23, 0  ;;  %1597 = vmatprep.subr.bf16.mxu1 %v1948_v8 }
 0x49d   : > { %1592 = vmatpush3.bf16.msra.mxu0 %v928_v24 }
 0x49e   : > { %1603 = vmatprep.subr.bf16.mxu0 %v1948_v8 }
 0x4a1   : > { %v1745_v25 = vpop.eup %1744 }
 0x4a2   : > { %v852_v26 = vsel %vm631_vm2, %v1745_v25, 0.0 }
 0x4a3   : > { %853 = vadd.xlane.f32.xlu1 %v852_v26 }
 0x4a7   : > { %v1747_v27 = vpop.eup %1746 }
 0x4a8   : > { %v855_v28 = vsel %vm631_vm2, %v1747_v27, 0.0 }
 0x4a9   : > { %v1749_v29 = vpop.eup %1748  ;;  %856 = vadd.xlane.f32.xlu0 %v855_v28  ;;  %v1735_v28 = vld [vmem:[#allocation7] sm:$0xff]  }
 0x4aa   : > { %v858_v30 = vsel %vm631_vm2, %v1749_v29, 0.0 }
 0x4ab   : > { %859 = vadd.xlane.f32.xlu1 %v858_v30 }
 0x4bc   : > { %970 = vrot.lane.b32.xlu1 %v2189_v31, %s1954_s15 }
 0x4bf   : > { %1018 = vrot.lane.b32.xlu0 %v2192_v34, %s1954_s15 }
 0x4ca   : > { %v851_v32 = vpop.xlane.xlu0 %850 }
 0x4cb   : > { %1750 = vrcp.f32 %v851_v32 }
 0x4d8   : > { %v1751_v33 = vpop.eup %1750 }
 0x4d9   : > { %v865_v35 = vmul.f32 %v1751_v33, %v1743_v10  ;;  %v1507_v33 = vld [vmem:[#allocation2] ss:$0 sm:$0xff] }
 0x4db   : > { %v869_v36 = vpack.c.bf16 %v865_v35, %v865_v35 }
 0x4dd   : > { %1588 = vmatmul.mubr.msk.bf16.vlgmr.msra.gmra.mxu1 %vm631_vm2, %v869_v36  ;;  %v1508_v36 = vld [vmem:[#allocation5] ss:$0 sm:$0xff] }
 0x4de   : > { %1599 = vmatprep.mubr.msk.bf16.mxu1 %vm1949_vm1, %v1948_v8 }
 0x52c   : > { %v854_v37 = vpop.xlane.xlu1 %853 }
 0x52d   : > { %1752 = vrcp.f32 %v854_v37 }
 0x532   : > { %v857_v38 = vpop.xlane.xlu0 %856 }
 0x533   : > { %1754 = vrcp.f32 %v857_v38 }
 0x534   : > { %v860_v39 = vpop.xlane.xlu1 %859 }
 0x535   : > { %1756 = vrcp.f32 %v860_v39 }
 0x536   : > { %v1019_v42 = vpop.permute.xlu0 %1018 }
 0x537   : > { %v1024_v44 = vsel %vm878_vm3, %v1019_v42, 0  ;;  %v1509_v42 = vld [vmem:[#allocation8] ss:$0 sm:$0xff] }
 0x538   : > { %v971_v31 = vpop.permute.xlu1 %970 }
 0x539   : > { %v976_v40 = vsel %vm878_vm3, %v971_v31, 0  ;;  %v1736_v31 = vld [vmem:[%s2352_s11 + $0x18] sm:$0xff]  }
 0x53a   : > { %v1753_v34 = vpop.eup %1752  ;;  %1598 = vmatpush3.bf16.msra.mxu1 %v976_v40  ;;  %v1737_v40 = vld [vmem:[%s2352_s11 + $0x10] sm:$0xff]  }
 0x53b   : > { %v866_v41 = vmul.f32 %v1753_v34, %v1745_v25  ;;  %1609 = vmatprep.subr.bf16.mxu1 %v1948_v8  ;;  %v1738_v34 = vld [vmem:[%s2352_s11 + $0x8] sm:$0xff]  }
 0x53d   : > { %v870_v43 = vpack.c.bf16 %v866_v41, %v866_v41  ;;  %v1739_v41 = vld [vmem:[%s2352_s11] sm:$0xff]  }
 0x53f   : > { %1594 = vmatmul.mubr.msk.bf16.vlgmr.msra.gmra.mxu0 %vm631_vm2, %v870_v43 }
 0x540   : > { %v1755_v45 = vpop.eup %1754  ;;  %1604 = vmatpush3.bf16.msra.mxu0 %v1024_v44  ;;  %1605 = vmatprep.mubr.msk.bf16.mxu0 %vm1949_vm1, %v1948_v8 }
 0x541   : > { %v867_v46 = vmul.f32 %v1755_v45, %v1747_v27  ;;  %1617 = vmatprep.subr.bf16.mxu0 %v1948_v8  ;;  %v1734_v27 = vld [vmem:[#allocation7 + $0x8] sm:$0xff]  }
 0x542   : > { %v1757_v47 = vpop.eup %1756 }
 0x543   : > { %v871_v48 = vpack.c.bf16 %v867_v46, %v867_v46  ;;  %v868_v49 = vmul.f32 %v1757_v47, %v1749_v29 }
 0x545   : > { %1600 = vmatmul.mubr.msk.bf16.vlgmr.msra.gmra.mxu1 %vm631_vm2, %v871_v48  ;;  %v872_v50 = vpack.c.bf16 %v868_v49, %v868_v49 }
 0x546   : > { %1613 = vmatprep.mubr.msk.bf16.mxu1 %vm1949_vm1, %v1948_v8  ;;  %1610 = vmatpush3.bf16.msra.mxu1 %v1732_v55 }
 0x547   : > { %1606 = vmatmul.mubr.msk.bf16.vlgmr.msra.gmra.mxu0 %vm631_vm2, %v872_v50  ;;  %1611 = vmatprep.subr.bf16.mxu1 %v1948_v8 }
 0x548   : > { %1621 = vmatprep.mubr.msk.bf16.mxu0 %vm1949_vm1, %v1948_v8  ;;  %1618 = vmatpush3.bf16.msra.mxu0 %v1734_v27 }
 0x549   : > { %1619 = vmatprep.subr.bf16.mxu0 %v1948_v8 }
 0x54a   : > { %1612 = vmatpush3.bf16.msra.mxu1 %v1733_v56 }
 0x54b   : > { %1625 = vmatprep.subr.bf16.mxu1 %v1948_v8 }
 0x54c   : > { %1620 = vmatpush3.bf16.msra.mxu0 %v1735_v28 }
 0x59d   : > { %v916_v51 = vpop.f32.mrf.mxu1 }
 0x59f   : > { %v1589_v52 = vpop.f32.mrf.mxu1 }
 0x5a1   : > { %v919_v53 = vpop.f32.mrf.mxu1 }
 0x5a3   : > { %v1590_v54 = vpop.f32.mrf.mxu1 }
 0x5ff   : > { %v964_v57 = vpop.f32.mrf.mxu0 }
 0x600   : > { %1067 = vrot.lane.b32.xlu1 %v964_v57, %s1955_s7  ;;  %s1959_s7 = smov [#allocation10]  }
 0x601   : > { %v1595_v58 = vpop.f32.mrf.mxu0 }
 0x603   : > { %v967_v59 = vpop.f32.mrf.mxu0 }
 0x605   : > { %v1596_v60 = vpop.f32.mrf.mxu0  ;;  %v1012_v61 = vpop.f32.mrf.mxu1 }
 0x606   : > { %1071 = vrot.lane.b32.xlu0 %v1012_v61, %s1956_s20  ;;  %s482_s20 = sand.u32 1, %s1932_s26  }
 0x607   : > { %v1601_v62 = vpop.f32.mrf.mxu1  ;;  %v1060_v63 = vpop.f32.mrf.mxu0  ;;  %s1362_s29 = scalar_lea.sflag [#allocation4], %s482_s20 }
 0x608   : > { %1075 = vrot.lane.b32.xlu1 %v1060_v63, %s1957_s30  ;;  %s1487_s30 = sshll.u32 %s482_s20, 3 }
 0x609   : > { %v1015_v1 = vpop.f32.mrf.mxu1  ;;  %v1607_v2 = vpop.f32.mrf.mxu0  ;;  %s484_s24 = scalar_lea.vmem [#allocation10], %s1487_s30  ;;  %s1872_s30 = sshll.u32 %s1959_s7, 4  ;;  %s1873_s30 = int_to_ptr.vmem [resolvable:$false] %s1872_s30 }
 0x60a   : > { %s1375_s15 = sshll.u32 %s484_s24, 4  ;;  %s1874_s16 = scalar_lea.vmem %s1873_s30, 256  ;;  %s2301_s15 = int_to_ptr.vmem [resolvable:$true] %s1375_s15 }
 0x60b   : > { %v1602_v3 = vpop.f32.mrf.mxu1  ;;  %v1063_v4 = vpop.f32.mrf.mxu0  ;;  %s1868_s22 = scalar_lea.vmem %s2301_s15, 128  ;;  %p1875_p2 = scmp.lt.s32.totalorder %s2301_s15, %s1873_s30 }
 0x60c   : > { %p1869_p11 = scmp.ne.s32.totalorder %s2301_s15, %s1868_s22  ;;  %p1876_p9 = scmp.lt.s32.totalorder %s1874_s16, %s1868_s22 }
 0x60d   : > { %v1608_v5 = vpop.f32.mrf.mxu0 }
 0x60e   : > { %p1870_p1 = pnand %p1869_p11, %p2375_p0  ;;  %p1877_p4 = por %p1876_p9, %p1875_p2 }
 0x610   : > { %p1871_p3 = pneg %p1870_p1 }
 0x612   : > { %p1878_p6 = pnand %p1877_p4, %p1871_p3 }
 0x672   : > { %v1068_v6 = vpop.permute.xlu1 %1067 }
 0x673   : > { %v1078_v7 = vsel %vm631_vm2, %v916_v51, %v1068_v6  ;;  %v1958_v6 = vmov 1065369472  }
 0x678   : > { %v1072_v9 = vpop.permute.xlu0 %1071 }
 0x679   : > { %v1080_v10 = vsel %vm1079_vm4, %v1078_v7, %v1072_v9 }
 0x67a   : > { %v1076_v11 = vpop.permute.xlu1 %1075 }
 0x67b   : > { %v1082_v12 = vsel %vm1081_vm5, %v1080_v10, %v1076_v11 }
 0x67c   : > { %v1083_v13 = vpack.c.bf16 %v1082_v12, %v1082_v12 }
 0x67e   : > { %1614 = vmatmul.mubr.msk.bf16.vlgmr.msra.gmra.mxu1 %vm503_vm0, %v1083_v13  ;;  %v1513_v13 = vld [vmem:[%s2353_s12] ss:$0 sm:$0xff] }
 0x67f   : > { %1633 = vmatprep.mubr.msk.bf16.mxu1 %vm1949_vm1, %v1948_v8  ;;  %1626 = vmatpush3.bf16.msra.mxu1 %v1736_v31 }
 0x680   : > { %1627 = vmatprep.subr.bf16.mxu1 %v1948_v8 }
 0x683   : > { %1628 = vmatpush3.bf16.msra.mxu1 %v1737_v40 }
 0x684   : > { %1629 = vmatprep.subr.bf16.mxu1 %v1948_v8 }
 0x687   : > { %1630 = vmatpush3.bf16.msra.mxu1 %v1738_v34 }
 0x688   : > { %1631 = vmatprep.subr.bf16.mxu1 %v1948_v8 }
 0x68b   : > { %1632 = vmatpush3.bf16.msra.mxu1 %v1739_v41 }
 0x73e   : > { %v1144_v15 = vpop.f32.mrf.mxu1 }
 0x73f   : > { %v1145_v16 = vadd.f32 %v1503_v14, %v1144_v15 }
 0x740   : > { %v1615_v17 = vpop.f32.mrf.mxu1 }
 0x741   : > { %v2267_v18 = vadd.f32 %v1145_v16, %v2151_v0 }
 0x742   : > { %v1147_v19 = vpop.f32.mrf.mxu1 }
 0x743   : > { %v1153_v20 = vsel %vm503_vm0, %v2267_v18, 0.0 }
 0x744   : > { %1154 = vadd.xlane.f32.xlu0 %v1153_v20  ;;  %v1616_v21 = vpop.f32.mrf.mxu1 }
 0x7cd   : > { %v1155_v22 = vpop.xlane.xlu0 %1154 }
 0x7ce   : > { %v1156_v23 = vmul.f32 0.03125, %v1155_v22 }
 0x7d0   : > { %v1157_v24 = vsub.f32 %v2267_v18, %v1156_v23 }
 0x7d2   : > { %v1158_v25 = vmul.f32 %v1157_v24, %v1157_v24 }
 0x7d4   : > { %v1159_v26 = vsel %vm503_vm0, %v1158_v25, 0.0 }
 0x7d5   : > { %1160 = vadd.xlane.f32.xlu1 %v1159_v26 }
 0x85e   : > { %v1161_v0 = vpop.xlane.xlu1 %1160 }
 0x85f   : > { %v1162_v29 = vmul.f32 0.03125, %v1161_v0 }
 0x861   : > { %v1163_v30 = vadd.f32 1e-06, %v1162_v29 }
 0x863   : > { %1758 = vrsqrt.f32 %v1163_v30 }
 0x870   : > { %v1759_v32 = vpop.eup %1758 }
 0x871   : > { %v1165_v35 = vmul.f32 %v1759_v32, %v1157_v24 }
 0x873   : > { %v1172_v37 = vmul.f32 %v1507_v33, %v1165_v35 }
 0x875   : > { %v1179_v38 = vadd.f32 %v1508_v36, %v1172_v37 }
 0x877   : > { %v1180_v39 = vpack.c.bf16 %v1179_v38, %v1179_v38 }
 0x879   : > { %1622 = vmatmul.mubr.msk.bf16.vlgmr.msra.gmra.mxu0 %vm503_vm0, %v1180_v39 }
 0x939   : > { %v1241_v43 = vpop.f32.mrf.mxu0 }
 0x93a   : > { %v1242_v44 = vadd.f32 %v1509_v42, %v1241_v43 }
 0x93b   : > { %v1623_v45 = vpop.f32.mrf.mxu0 }
 0x93c   : > { %v1247_v46 = vpack.c.bf16 %v1242_v44, %v1242_v44 }
 0x93d   : > { %v1244_v47 = vpop.f32.mrf.mxu0 }
 0x93e   : > { %v1249_v48 = vmul.bf16 1060454197, %v1247_v46  ;;  %v1248_v10 = vmul.bf16 1056980736, %v1247_v46 }
 0x93f   : > { %v1624_v49 = vpop.f32.mrf.mxu0 }
 0x940   : > { %v1252_v50 = vand.u32 2147450879, %v1249_v48  ;;  %vm1250_vm6 = vcmp.lt.bf16.partialorder %v1249_v48, 0 }
 0x941   : > { %v1251_v7 = vsel %vm1250_vm6, 3212885888, %v1958_v6 }
 0x942   : > { %v1253_v51 = vmul.bf16 1051213480, %v1252_v50  ;;  %v1266_v53 = vsub.bf16 0, %v1252_v50 }
 0x944   : > { %v1254_v52 = vadd.bf16 1065369472, %v1253_v51  ;;  %v1267_v54 = vmul.bf16 %v1266_v53, %v1252_v50 }
 0x946   : > { %1760 = vrcp.bf16 %v1254_v52  ;;  %v1269_v56 = vmul.bf16 1069105081, %v1267_v54 }
 0x948   : > { %1762 = vpow.bf16 %v1269_v56 }
 0x954   : > { %v1761_v8 = vpop.eup %1760 }
 0x955   : > { %v1256_v55 = vmul.bf16 1065369472, %v1761_v8 }
 0x956   : > { %v1763_v3 = vpop.eup %1762 }
 0x957   : > { %v1257_v57 = vmul.bf16 1065893768, %v1256_v55 }
 0x959   : > { %v1258_v58 = vadd.bf16 3216687034, %v1257_v57 }
 0x95b   : > { %v1259_v59 = vmul.bf16 %v1258_v58, %v1256_v55 }
 0x95d   : > { %v1260_v60 = vadd.bf16 1068908470, %v1259_v59 }
 0x95f   : > { %v1261_v61 = vmul.bf16 %v1260_v60, %v1256_v55 }
 0x961   : > { %v1262_v62 = vadd.bf16 3197288082, %v1261_v61 }
 0x963   : > { %v1263_v63 = vmul.bf16 %v1262_v62, %v1256_v55 }
 0x965   : > { %v1264_v1 = vadd.bf16 1048723074, %v1263_v63 }
 0x967   : > { %v1265_v2 = vmul.bf16 %v1264_v1, %v1256_v55 }
 0x969   : > { %v1271_v4 = vmul.bf16 %v1763_v3, %v1265_v2 }
 0x96b   : > { %v1272_v5 = vsub.bf16 1065369472, %v1271_v4 }
 0x96d   : > { %v1273_v9 = vmul.bf16 %v1272_v5, %v1251_v7 }
 0x96f   : > { %v1274_v11 = vadd.bf16 1065369472, %v1273_v9 }
 0x971   : > { %v1275_v12 = vmul.bf16 %v1274_v11, %v1248_v10 }
 0x973   : > { %1634 = vmatmul.mubr.msk.bf16.vlgmr.msra.gmra.mxu1 %vm1315_vm7, %v1275_v12 }
 0xa33   : > { %v1353_v14 = vpop.f32.mrf.mxu1 }
 0xa34   : > { %v1354_v15 = vadd.f32 %v1513_v13, %v1353_v14 }
 0xa35   : > { %v1635_v16 = vpop.f32.mrf.mxu1 }
 0xa36   : > { %v1359_v17 = vadd.f32 %v1354_v15, %v2267_v18 }
 0xa37   : > { %v1356_v19 = vpop.f32.mrf.mxu1 }
 0xa38   : > { %1360 = vst.msk [vmem:[%s484_s24] sm:$0xff] %vm503_vm0, %v1359_v17 }
 0xa39   : > { %v1636_v20 = vpop.f32.mrf.mxu1 }
 0xa3a   : > { %1881 = shalt.err (!%p1878_p6)
}
 0xa3b   : > { %s1882_s27 = scalar_lea.hbm %s2299_s17, 128  ;;  %s1886_s24 = scalar_lea.hbm %s2354_s13, 256 }
 0xa3c   : > { %p1883_p13 = scmp.ne.s32.totalorder %s2299_s17, %s1882_s27  ;;  %p1887_p8 = scmp.lt.s32.totalorder %s2299_s17, %s2354_s13 }
 0xa3d   : > { %p1888_p12 = scmp.lt.s32.totalorder %s1886_s24, %s1882_s27 }
 0xa3e   : > { %p1884_p5 = pnand %p1883_p13, %p2375_p0 }
 0xa3f   : > { %p1889_p10 = por %p1888_p12, %p1887_p8 }
 0xa40   : > { %p1885_p7 = pneg %p1884_p5 }
 0xa42   : > { %p1890_p11 = pnand %p1889_p10, %p1885_p7 }
 0xa44   : > { %1893 = shalt.err (!%p1890_p11)
}
 0xa45   : > { %1653 = dma.vmem_to_hbm [thread:$0]  (%p2375_p0), %s2301_s15, 128, %s2299_s17, %s1362_s29  }
 0xa46 PF: > { %p1680_p1 = scmp.ge.s32.totalorder %s1940_s28, 2  ;;  %s1387_s22 = sand.u32 1, %s1928_s25  }
 0xa47   : > { %p2376_p3 = scmp.ne.s32.totalorder %s2365_s19, 0  ;;  %s1388_s7 = scalar_lea.sflag [#allocation4], %s1387_s22 }
 0xa49   : > { %p1669_p2 = pnand %p1680_p1, %p2376_p3 }
 0xa4b   : > { %p1670_p9 = pneg %p1669_p2 }
 0xa4d   : > { %1923 = dma.done.wait (%p1670_p9), %s1388_s7, 128  }
 0xa4e   : > { %1925 = vsyncadd (%p1670_p9), %s1388_s7, 4294967168  ;;  %s2377_s28 = sld [smem:[#allocation16_spill]]  ;;  %s2380_s25 = smov %s1932_s26 }
 0xa4f   : > { %s2378_s30 = sld [smem:[#allocation15_spill]] }
 0xa50   : > { %s2379_s27 = sld [smem:[#allocation17_spill]] }
 0xa54   : > { %p26_p4 = scmp.ge.s32.totalorder %s2377_s28, 4  }
 0xa55   : > { %s2381_s26 = smov %s2378_s30 }
 0xa56   :  { %28 = sbr.rel (!%p26_p4) target bundleno = 8 (0x8), region = 124 }
 0xa5b   :  { %1393 = vsyncpa [#allocation3], 1 }
 0xa5c   :  { %1395 = vsyncpa [#allocation3 + $0x1], 1 }
 0xa5d   :  { %1396 = vsyncpa [#allocation6], 1 }
 0xa5e   :  { %1397 = vsyncpa [#allocation9], 1 }
 0xa5f   :  { %1398 = vsyncpa [#allocation4], 1 }
 0xa60   :  { %1400 = vsyncpa [#allocation4 + $0x1], 1 }

</bundles_post_ra>
